<compile_context>
chip_gen: v5e
topology: v5e:2x2
jax: 0.10.0
libtpu: 0.0.40
codegen_flags: <defaults>
</compile_context>

<pallas_src>
import functools

import numpy as np
import jax
import jax.numpy as jnp
from jax import lax
from jax.experimental import pallas as pl
from jax.experimental.pallas import tpu as pltpu

K = 7                  # conv kernel size
PAD = (K - 1) // 2     # 3


def spatial_gate_kernel(wmask_ref, x_ref, o_ref, *, C, W, HWp, c_chunk):
    """One batch element per grid step.

    wmask_ref: VMEM (K, 16, HWp) f32 constant: per-kw weight columns with the
               row/col/lane-padding boundary masks already folded in
               (sublane 2*kh -> max-map weight, 2*kh+1 -> mean-map weight).
    x_ref:     VMEM (C, HWp) input block (batch dim squeezed).
    o_ref:     VMEM (C, HWp) output block = x * sigmoid(conv7x7(pool(x))).
    """
    f32 = jnp.float32

    # ---- ChannelPool: max / mean over channels (chunked to bound live ranges).
    mx = jnp.full((1, HWp), -jnp.inf, f32)
    sm = jnp.zeros((1, HWp), f32)
    for c0 in range(0, C, c_chunk):
        n = min(c_chunk, C - c0)
        xc = x_ref[pl.ds(c0, n), :].astype(f32)
        mx = jnp.maximum(mx, jnp.max(xc, axis=0, keepdims=True))
        sm = sm + jnp.sum(xc, axis=0, keepdims=True)
    mean = sm * f32(1.0 / C)

    # ---- Sublane-packed stack: rows (2*kh, 2*kh+1) = (max, mean) pre-shifted
    #      by the row offset dh*W (dh = kh - 3); rows 14/15 are zero padding.
    pooled = jnp.concatenate([mx, mean], axis=0)                  # (2, HWp)
    parts = []
    for kh in range(K):
        sh = (-(kh - PAD) * W) % HWp
        parts.append(pooled if sh == 0 else pltpu.roll(pooled, sh, axis=1))
    parts.append(jnp.zeros((2, HWp), f32))
    stack = jnp.concatenate(parts, axis=0)                        # (16, HWp)

    # ---- 7x7 conv: 7 lane rolls of the packed stack, each FMA'd with the
    #      pre-masked per-kw weight slab (zero-padding handled entirely inside
    #      wmask), then ONE sublane reduction.
    acc16 = stack * wmask_ref[PAD]                                # kw=3, dw=0
    for kw in range(K):
        if kw == PAD:
            continue
        sh = (-(kw - PAD)) % HWp
        acc16 = acc16 + pltpu.roll(stack, sh, axis=1) * wmask_ref[kw]
    conv = jnp.sum(acc16, axis=0, keepdims=True)                  # (1, HWp)
    scale = jax.nn.sigmoid(conv)                                  # (1, HWp)

    # ---- Gating: out = x * scale (chunked re-read of x; full-lane stores).
    for c0 in range(0, C, c_chunk):
        n = min(c_chunk, C - c0)
        xc = x_ref[pl.ds(c0, n), :].astype(f32)
        o_ref[pl.ds(c0, n), :] = (xc * scale).astype(o_ref.dtype)


def spatial_gate(x, weight, *, c_chunk=8):
    """x: (B, C, H, W); weight: (1, 2, 7, 7) conv weight (bias-free).

    Matches SpatialGate.forward: x * sigmoid(conv7x7(cat([max_c(x), mean_c(x)]))).
    """
    B, C, H, W = x.shape
    HW = H * W
    HWp = ((HW + 127) // 128) * 128            # lane-dense flat spatial axis

    x_flat = x.reshape(B, C, HW)
    if HWp != HW:
        x_flat = jnp.pad(x_flat, ((0, 0), (0, 0), (0, HWp - HW)))

    # Static boundary masks on the flat (padded) spatial axis (numpy constants).
    idx = np.arange(HWp)
    valid = idx < HW
    row = idx // W
    col = idx % W
    rm = np.stack([(valid & (row + (kh - PAD) >= 0) & (row + (kh - PAD) < H))
                   for kh in range(K)]).astype(np.float32)        # (K, HWp)
    cm = np.stack([(valid & (col + (kw - PAD) >= 0) & (col + (kw - PAD) < W))
                   for kw in range(K)]).astype(np.float32)        # (K, HWp)

    # wmask[kw, 2*kh + c, i] = weight[0, c, kh, kw] * rm[kh, i] * cm[kw, i]
    w = weight.reshape(2, K, K).astype(jnp.float32)               # (c, kh, kw)
    wm = (jnp.transpose(w, (2, 1, 0))[:, :, :, None]              # (kw, kh, c, 1)
          * jnp.asarray(rm)[None, :, None, :]
          * jnp.asarray(cm)[:, None, None, :])                    # (kw, kh, c, HWp)
    wm = wm.reshape(K, 2 * K, HWp)
    wmask = jnp.zeros((K, 16, HWp), jnp.float32).at[:, :2 * K, :].set(wm)

    cc = max(1, min(c_chunk, C))
    kernel = functools.partial(spatial_gate_kernel, C=C, W=W, HWp=HWp, c_chunk=cc)

    out_flat = pl.pallas_call(
        kernel,
        out_shape=jax.ShapeDtypeStruct((B, C, HWp), x.dtype),
        grid=(B,),
        in_specs=[
            pl.BlockSpec((K, 16, HWp), lambda b: (0, 0, 0)),             # resident constant
            pl.BlockSpec((pl.Squeezed(), C, HWp), lambda b: (b, 0, 0)),  # x, one batch / step
        ],
        out_specs=pl.BlockSpec((pl.Squeezed(), C, HWp), lambda b: (b, 0, 0)),
        compiler_params=pltpu.CompilerParams(
            dimension_semantics=("parallel",),        # megacore / 2-TC split over B
            vmem_limit_bytes=32 * 1024 * 1024,        # safe on v5e/v6e/v7x
        ),
    )(wmask, x_flat)

    return out_flat[..., :HW].reshape(B, C, H, W)


def spatial_gate_reference(x, weight):
    """Pure-JAX reference matching the PyTorch module semantics."""
    mx = jnp.max(x, axis=1, keepdims=True)
    mean = jnp.mean(x, axis=1, keepdims=True)
    pooled = jnp.concatenate([mx, mean], axis=1)          # (B, 2, H, W)
    conv = lax.conv_general_dilated(
        pooled, weight,
        window_strides=(1, 1),
        padding=((PAD, PAD), (PAD, PAD)),
        dimension_numbers=("NCHW", "OIHW", "NCHW"),
    )                                                     # (B, 1, H, W)
    return x * jax.nn.sigmoid(conv)


if __name__ == "__main__":
    key = jax.random.PRNGKey(0)
    k1, k2, k3, k4 = jax.random.split(key, 4)

    # Case 1: lane-dense spatial size (16 * 16 = 256, a multiple of 128).
    B, C, H, W = 2, 4, 16, 16
    x = jax.random.normal(k1, (B, C, H, W), dtype=jnp.float32)
    weight = 0.1 * jax.random.normal(k2, (1, 2, K, K), dtype=jnp.float32)
    out = jax.block_until_ready(spatial_gate(x, weight))
    ref = jax.block_until_ready(spatial_gate_reference(x, weight))
    assert out.shape == (B, C, H, W)
    assert jnp.allclose(out, ref, rtol=1e-4, atol=1e-5), "mismatch vs reference (16x16)"

    # Case 2: non-pow2, non-128-multiple spatial size (7 * 7 = 49 -> padded to 128).
    B2, C2, H2, W2 = 2, 6, 7, 7
    x2 = jax.random.normal(k3, (B2, C2, H2, W2), dtype=jnp.float32)
    w2 = 0.1 * jax.random.normal(k4, (1, 2, K, K), dtype=jnp.float32)
    out2 = jax.block_until_ready(spatial_gate(x2, w2))
    ref2 = jax.block_until_ready(spatial_gate_reference(x2, w2))
    assert jnp.allclose(out2, ref2, rtol=1e-4, atol=1e-5), "mismatch vs reference (7x7)"

    print("KERNEL_OK")
</pallas_src>

<mosaic_0001>
module attributes {stable_mosaic.version = 11 : i64} {
  func.func @spatial_gate_kernel(%arg0: i32, %arg1: memref<7x16x256xf32, #tpu.memory_space<vmem>>, %arg2: memref<1x4x256xf32, #tpu.memory_space<vmem>>, %arg3: memref<1x4x256xf32, #tpu.memory_space<vmem>>) attributes {dimension_semantics = [#tpu.dimension_semantics<parallel>], iteration_bounds = array<i64: 2>, scalar_prefetch = 0 : i64, scratch_operands = 0 : i64, tpu.core_type = #tpu.core_type<tc>, window_params = [{pipeline_mode = #tpu.pipeline_mode<synchronous>, transform_indices = @transform_0, window_bounds = array<i64: 7, 16, 256>}, {transform_indices = @transform_1, window_bounds = array<i64: 1, 4, 256>}, {transform_indices = @transform_2, window_bounds = array<i64: 1, 4, 256>}]} {
    %cst = arith.constant 0xFF800000 : f32
    %0 = vector.broadcast %cst : f32 to vector<1x256xf32>
    %cst_0 = arith.constant 0.000000e+00 : f32
    %1 = vector.broadcast %cst_0 : f32 to vector<1x256xf32>
    %c0 = arith.constant 0 : index
    %c0_1 = arith.constant 0 : index
    %c0_2 = arith.constant 0 : index
    %2 = vector.load %arg2[%c0, %c0_1, %c0_2] : memref<1x4x256xf32, #tpu.memory_space<vmem>>, vector<1x4x256xf32>
    %3 = vector.shape_cast %2 : vector<1x4x256xf32> to vector<4x256xf32>
    %cst_3 = arith.constant dense<0xFF800000> : vector<256xf32>
    %4 = vector.multi_reduction <maximumf>, %3, %cst_3 [0] : vector<4x256xf32> to vector<256xf32>
    %5 = vector.shape_cast %4 : vector<256xf32> to vector<1x256xf32>
    %6 = arith.maximumf %0, %5 : vector<1x256xf32>
    %cst_4 = arith.constant dense<0.000000e+00> : vector<256xf32>
    %7 = vector.multi_reduction <add>, %3, %cst_4 [0] : vector<4x256xf32> to vector<256xf32>
    %8 = vector.shape_cast %7 : vector<256xf32> to vector<1x256xf32>
    %9 = arith.addf %1, %8 : vector<1x256xf32>
    %cst_5 = arith.constant 2.500000e-01 : f32
    %10 = vector.broadcast %cst_5 : f32 to vector<1x256xf32>
    %11 = arith.mulf %9, %10 : vector<1x256xf32>
    %12 = tpu.concatenate %6, %11 in 0 : vector<1x256xf32>, vector<1x256xf32> -> vector<2x256xf32>
    %c48_i32 = arith.constant 48 : i32
    %13 = tpu.dynamic_rotate %12 by %c48_i32 dim 1 : vector<2x256xf32>, i32 -> vector<2x256xf32>
    %c32_i32 = arith.constant 32 : i32
    %14 = tpu.dynamic_rotate %12 by %c32_i32 dim 1 : vector<2x256xf32>, i32 -> vector<2x256xf32>
    %c16_i32 = arith.constant 16 : i32
    %15 = tpu.dynamic_rotate %12 by %c16_i32 dim 1 : vector<2x256xf32>, i32 -> vector<2x256xf32>
    %c240_i32 = arith.constant 240 : i32
    %16 = tpu.dynamic_rotate %12 by %c240_i32 dim 1 : vector<2x256xf32>, i32 -> vector<2x256xf32>
    %c224_i32 = arith.constant 224 : i32
    %17 = tpu.dynamic_rotate %12 by %c224_i32 dim 1 : vector<2x256xf32>, i32 -> vector<2x256xf32>
    %c208_i32 = arith.constant 208 : i32
    %18 = tpu.dynamic_rotate %12 by %c208_i32 dim 1 : vector<2x256xf32>, i32 -> vector<2x256xf32>
    %cst_6 = arith.constant 0.000000e+00 : f32
    %19 = vector.broadcast %cst_6 : f32 to vector<2x256xf32>
    %20 = tpu.concatenate %13, %14, %15, %12, %16, %17, %18, %19 in 0 : vector<2x256xf32>, vector<2x256xf32>, vector<2x256xf32>, vector<2x256xf32>, vector<2x256xf32>, vector<2x256xf32>, vector<2x256xf32>, vector<2x256xf32> -> vector<16x256xf32>
    %c3 = arith.constant 3 : index
    %c0_7 = arith.constant 0 : index
    %c0_8 = arith.constant 0 : index
    %21 = vector.load %arg1[%c3, %c0_7, %c0_8] : memref<7x16x256xf32, #tpu.memory_space<vmem>>, vector<1x16x256xf32>
    %22 = vector.shape_cast %21 : vector<1x16x256xf32> to vector<16x256xf32>
    %23 = arith.mulf %20, %22 : vector<16x256xf32>
    %c3_i32 = arith.constant 3 : i32
    %24 = tpu.dynamic_rotate %20 by %c3_i32 dim 1 : vector<16x256xf32>, i32 -> vector<16x256xf32>
    %c0_9 = arith.constant 0 : index
    %c0_10 = arith.constant 0 : index
    %c0_11 = arith.constant 0 : index
    %25 = vector.load %arg1[%c0_9, %c0_10, %c0_11] : memref<7x16x256xf32, #tpu.memory_space<vmem>>, vector<1x16x256xf32>
    %26 = vector.shape_cast %25 : vector<1x16x256xf32> to vector<16x256xf32>
    %27 = arith.mulf %24, %26 : vector<16x256xf32>
    %28 = arith.addf %23, %27 : vector<16x256xf32>
    %c2_i32 = arith.constant 2 : i32
    %29 = tpu.dynamic_rotate %20 by %c2_i32 dim 1 : vector<16x256xf32>, i32 -> vector<16x256xf32>
    %c1 = arith.constant 1 : index
    %c0_12 = arith.constant 0 : index
    %c0_13 = arith.constant 0 : index
    %30 = vector.load %arg1[%c1, %c0_12, %c0_13] : memref<7x16x256xf32, #tpu.memory_space<vmem>>, vector<1x16x256xf32>
    %31 = vector.shape_cast %30 : vector<1x16x256xf32> to vector<16x256xf32>
    %32 = arith.mulf %29, %31 : vector<16x256xf32>
    %33 = arith.addf %28, %32 : vector<16x256xf32>
    %c1_i32 = arith.constant 1 : i32
    %34 = tpu.dynamic_rotate %20 by %c1_i32 dim 1 : vector<16x256xf32>, i32 -> vector<16x256xf32>
    %c2 = arith.constant 2 : index
    %c0_14 = arith.constant 0 : index
    %c0_15 = arith.constant 0 : index
    %35 = vector.load %arg1[%c2, %c0_14, %c0_15] : memref<7x16x256xf32, #tpu.memory_space<vmem>>, vector<1x16x256xf32>
    %36 = vector.shape_cast %35 : vector<1x16x256xf32> to vector<16x256xf32>
    %37 = arith.mulf %34, %36 : vector<16x256xf32>
    %38 = arith.addf %33, %37 : vector<16x256xf32>
    %c255_i32 = arith.constant 255 : i32
    %39 = tpu.dynamic_rotate %20 by %c255_i32 dim 1 : vector<16x256xf32>, i32 -> vector<16x256xf32>
    %c4 = arith.constant 4 : index
    %c0_16 = arith.constant 0 : index
    %c0_17 = arith.constant 0 : index
    %40 = vector.load %arg1[%c4, %c0_16, %c0_17] : memref<7x16x256xf32, #tpu.memory_space<vmem>>, vector<1x16x256xf32>
    %41 = vector.shape_cast %40 : vector<1x16x256xf32> to vector<16x256xf32>
    %42 = arith.mulf %39, %41 : vector<16x256xf32>
    %43 = arith.addf %38, %42 : vector<16x256xf32>
    %c254_i32 = arith.constant 254 : i32
    %44 = tpu.dynamic_rotate %20 by %c254_i32 dim 1 : vector<16x256xf32>, i32 -> vector<16x256xf32>
    %c5 = arith.constant 5 : index
    %c0_18 = arith.constant 0 : index
    %c0_19 = arith.constant 0 : index
    %45 = vector.load %arg1[%c5, %c0_18, %c0_19] : memref<7x16x256xf32, #tpu.memory_space<vmem>>, vector<1x16x256xf32>
    %46 = vector.shape_cast %45 : vector<1x16x256xf32> to vector<16x256xf32>
    %47 = arith.mulf %44, %46 : vector<16x256xf32>
    %48 = arith.addf %43, %47 : vector<16x256xf32>
    %c253_i32 = arith.constant 253 : i32
    %49 = tpu.dynamic_rotate %20 by %c253_i32 dim 1 : vector<16x256xf32>, i32 -> vector<16x256xf32>
    %c6 = arith.constant 6 : index
    %c0_20 = arith.constant 0 : index
    %c0_21 = arith.constant 0 : index
    %50 = vector.load %arg1[%c6, %c0_20, %c0_21] : memref<7x16x256xf32, #tpu.memory_space<vmem>>, vector<1x16x256xf32>
    %51 = vector.shape_cast %50 : vector<1x16x256xf32> to vector<16x256xf32>
    %52 = arith.mulf %49, %51 : vector<16x256xf32>
    %53 = arith.addf %48, %52 : vector<16x256xf32>
    %cst_22 = arith.constant dense<0.000000e+00> : vector<256xf32>
    %54 = vector.multi_reduction <add>, %53, %cst_22 [0] : vector<16x256xf32> to vector<256xf32>
    %55 = vector.shape_cast %54 : vector<256xf32> to vector<1x256xf32>
    %56 = arith.negf %55 : vector<1x256xf32>
    %57 = math.exp %56 : vector<1x256xf32>
    %cst_23 = arith.constant 1.000000e+00 : f32
    %58 = vector.broadcast %cst_23 : f32 to vector<1x256xf32>
    %59 = arith.addf %58, %57 : vector<1x256xf32>
    %60 = arith.divf %58, %59 : vector<1x256xf32>
    %c0_24 = arith.constant 0 : index
    %c0_25 = arith.constant 0 : index
    %c0_26 = arith.constant 0 : index
    %61 = vector.load %arg2[%c0_24, %c0_25, %c0_26] : memref<1x4x256xf32, #tpu.memory_space<vmem>>, vector<1x4x256xf32>
    %62 = vector.shape_cast %61 : vector<1x4x256xf32> to vector<4x256xf32>
    %63 = vector.broadcast %60 : vector<1x256xf32> to vector<4x256xf32>
    %64 = arith.mulf %62, %63 : vector<4x256xf32>
    %c0_27 = arith.constant 0 : index
    %c0_28 = arith.constant 0 : index
    %c0_29 = arith.constant 0 : index
    %65 = vector.load %arg3[%c0_27, %c0_28, %c0_29] : memref<1x4x256xf32, #tpu.memory_space<vmem>>, vector<1x4x256xf32>
    %66 = vector.shape_cast %65 : vector<1x4x256xf32> to vector<4x256xf32>
    %67 = vector.shape_cast %64 : vector<4x256xf32> to vector<1x4x256xf32>
    tpu.vector_store %arg3[%c0_27, %c0_28, %c0_29], %67 {strides = array<i32>} : memref<1x4x256xf32, #tpu.memory_space<vmem>>, vector<1x4x256xf32>,
    return
  }
  func.func @transform_0(%arg0: i32) -> (i32, i32, i32) {
    %c0_i32 = arith.constant 0 : i32
    %c0_i32_0 = arith.constant 0 : i32
    %c0_i32_1 = arith.constant 0 : i32
    %c0_i32_2 = arith.constant 0 : i32
    return %c0_i32, %c0_i32_0, %c0_i32_1 : i32, i32, i32
  }
  func.func @transform_1(%arg0: i32) -> (i32, i32, i32) {
    %c0_i32 = arith.constant 0 : i32
    %c0_i32_0 = arith.constant 0 : i32
    %c0_i32_1 = arith.constant 0 : i32
    return %arg0, %c0_i32, %c0_i32_0 : i32, i32, i32
  }
  func.func @transform_2(%arg0: i32) -> (i32, i32, i32) {
    %c0_i32 = arith.constant 0 : i32
    %c0_i32_0 = arith.constant 0 : i32
    %c0_i32_1 = arith.constant 0 : i32
    return %arg0, %c0_i32, %c0_i32_0 : i32, i32, i32
  }
}

</mosaic_0001>

<bundles_post_ra>
// kernel: tpu_custom_call.1
= control target key start
LH: loop header
LB: loop body
LE: loop exit
PB: predicated region body
PF: predicated region fallthrough
CT: control target
= control target key end

     0   :  { %7 = vsyncpa [#allocation3], 0  ;;  %s1194_s0 = inlined_call_operand.hbm [shape: f32[7,16,256], index: 0, kind: input, shape index: {}]   ;;  %s1195_s1 = inlined_call_operand.hbm [shape: f32[2,4,256], index: 1, kind: input, shape index: {}]   ;;  %s1196_s2 = inlined_call_operand.hbm [shape: f32[2,4,256], index: 2, kind: output, shape index: {}]  }
   0x1   :  { %8 = vsyncpa [#allocation6], 0 }
   0x2   :  { %10 = vsyncpa [#allocation6 + $0x1], 0 }
   0x3   :  { %11 = vsyncpa [#allocation4], 0 }
   0x4   :  { %13 = vsyncpa [#allocation4 + $0x1], 0  ;;  %s898_s9 = smov 0   ;;  %s900_s10 = smov 0  }
   0x5   :  { %s902_s11 = smov 0   ;;  %s904_s12 = smov 0  }
   0x6 LB: > { %s108_s15 = sshll.u32 %s1194_s0, 4  ;;  %s922_s16 = sadd.s32 4294967295, %s866_s12   ;;  %s866_s12 = sphi %s904_s12, %s1208_s12   ;;  %s862_s11 = sphi %s902_s11, %s1207_s11   ;;  %s858_s10 = sphi %s900_s10, %s1206_s10   ;;  %s854_s9 = sphi %s898_s9, %s1205_s9   ;;  %s109_s15 = int_to_ptr.hbm [resolvable:$true] %s108_s15 }
   0x7   : > { %p638_p0 = scmp.ge.s32.totalorder %s866_s12, 1  ;;  %p61_p1 = scmp.eq.s32.totalorder %s922_s16, 0 }
   0x8   : > { %p97_p2 = scmp.lt.s32.totalorder %s866_s12, 3  ;;  %s868_s18 = smov [#allocation2]  }
   0x9   : > { %s110_s19 = sshll.u32 %s868_s18, 4  ;;  %s869_s20 = smov 256   ;;  %s111_s19 = int_to_ptr.vmem [resolvable:$true] %s110_s19 }
   0xa   : > { %p927_p3 = pnand %p638_p0, %p97_p2  ;;  %s870_s21 = smov 16  }
   0xb   : > { %s637_s22 = sadd.s32 4294967294, %s866_s12   ;;  %s938_s23 = sadd.s32 1, %s866_s12  }
   0xc   : > { %p665_p4 = pneg %p927_p3  ;;  %s47_s24 = sadd.s32 1, %s862_s11 }
   0xd   : > { %s44_s25 = ssub.s32 %s866_s12, %s938_s23  ;;  %p54_p7 = scmp.ne.s32.totalorder %s862_s11, %s858_s10 }
   0xe   : > { %p666_p6 = pnand %p665_p4, %p61_p1  ;;  %p45_p8 = scmp.eq.s32.totalorder %s44_s25, 0 }
   0xf   : > { %p55_p9 = scmp.eq.s32.totalorder %s866_s12, 0  ;;  %p60_p10 = scmp.ne.s32.totalorder %s858_s10, %s854_s9 }
  0x10   : > { %668 = dma.hbm_to_vmem [thread:$0]  (!%p666_p6), %s109_s15, 3584, %s111_s19, [#allocation3], %s869_s20, %s869_s20, %s870_s21  }
  0x11   : > { %p84_p11 = scmp.eq.s32.totalorder %s922_s16, 1  ;;  %p954_p12 = por %p61_p1, %p60_p10 }
  0x12   : > { %s950_s26 = scalar_select %p45_p8, %s862_s11, %s47_s24  }
  0x13   : > { %p958_p13 = por %p84_p11, %p54_p7  ;;  %p90_p0 = scmp.eq.s32.totalorder %s637_s22, 1 }
  0x14   : > { %p56_p2 = por %p55_p9, %p54_p7  ;;  %s124_s29 = sand.u32 1, %s862_s11  }
  0x15   : > { %p963_p4 = por %p90_p0, %p60_p10  ;;  %p678_p6 = scmp.lt.s32.totalorder %s866_s12, 2 }
  0x16   : > { %s641_s3 = sshll.u32 %s124_s29, 3  ;;  %s655_s4 = sshll.u32 %s866_s12, 3 }
  0x17   : > { %s133_s7 = scalar_lea.hbm %s1195_s1, %s655_s4  ;;  %s128_s13 = scalar_lea.vmem [#allocation5], %s641_s3 }
  0x18   : > { %s135_s8 = sshll.u32 %s133_s7, 4  ;;  %s137_s14 = sshll.u32 %s128_s13, 4  ;;  %s136_s8 = int_to_ptr.hbm [resolvable:$true] %s135_s8  ;;  %s138_s14 = int_to_ptr.vmem [resolvable:$true] %s137_s14 }
  0x19   : > { %p972_p8 = pnand %p678_p6, %p56_p2  ;;  %s125_s18 = scalar_lea.sflag [#allocation6], %s124_s29 }
  0x1a   : > { %s766_s19 = sshra.s32 %s136_s8, 4  ;;  %s773_s24 = scalar_lea.hbm %s1195_s1, 16  ;;  %s767_s19 = int_to_ptr.hbm [resolvable:$true] %s766_s19 }
  0x1b   : > { %s768_s20 = scalar_lea.hbm %s767_s19, 8  ;;  %p770_p9 = pneg %p972_p8 }
  0x1c   : > { %p769_p7 = scmp.ne.s32.totalorder %s767_s19, %s768_s20  ;;  %p774_p0 = scmp.lt.s32.totalorder %s767_s19, %s1195_s1 }
  0x1d   : > { %p775_p2 = scmp.lt.s32.totalorder %s773_s24, %s768_s20 }
  0x1e   : > { %p771_p10 = pnand %p770_p9, %p769_p7 }
  0x1f   : > { %p776_p6 = por %p775_p2, %p774_p0 }
  0x20   : > { %p772_p11 = pneg %p771_p10 }
  0x22   : > { %p777_p5 = pnand %p776_p6, %p772_p11 }
  0x24   : > { %780 = shalt.err (!%p777_p5)
}
  0x25   : > { %672 = dma.hbm_to_vmem [thread:$0]  (!%p972_p8), %s136_s8, 128, %s138_s14, %s125_s18  }
  0x26   : > { %146 = sbr.rel (%p927_p3) target bundleno = 452 (0x1c4), region = 28 }
  0x2b   : > { %841 = dma.done.wait (%p61_p1), [#allocation3], 3584  }
  0x2c   : > { %843 = vsyncadd (%p61_p1), [#allocation3], 4294963712  ;;  %s993_s29 = sand.u32 1, %s858_s10  }
  0x2d   : > { %s646_s4 = sshll.u32 %s993_s29, 3  ;;  %s154_s5 = scalar_lea.sflag [#allocation6], %s993_s29 }
  0x2e   : > { %s157_s6 = scalar_lea.vmem [#allocation5], %s646_s4 }
  0x2f   : > { %845 = dma.done.wait (%p954_p12), %s154_s5, 128  }
  0x30   : > { %847 = vsyncadd (%p954_p12), %s154_s5, 4294967168  ;;  %v1003_v0 = vld [vmem:[%s157_s6] sm:$0xff]  ;;  %vm186_vm0 = vcmask 1043456   ;;  %vm224_vm1 = vcmask 1040384   ;;  %s871_s17 = smov 96   ;;  %s872_s27 = smov 32   ;;  %v231_v43 = vlaneseq }
  0x31   : > { %181 = vst [vmem:[#allocation1] ss:$2 sm:$0xff] %v1003_v0  ;;  %s873_s7 = smov 16   ;;  %s874_s8 = smov 80   ;;  %vm301_vm7 = vcmask 1041408   ;;  %vm306_vm9 = vcmask 1045504  }
  0x32   : > { %s875_s13 = smov 48   ;;  %s876_s14 = smov 112   ;;  %v1027_v45 = vand.u32 127, %v231_v43 }
  0x33   : > { %s877_s15 = smov 3   ;;  %s878_s18 = smov 2  }
  0x34   : > { %vm247_vm2 = vcmp.lt.s32.totalorder %v1027_v45, 16  ;;  %vm261_vm3 = vcmp.lt.s32.totalorder %v1027_v45, 96  ;;  %vm240_vm4 = vcmp.lt.s32.totalorder %v1027_v45, 32  ;;  %vm268_vm5 = vcmp.lt.s32.totalorder %v1027_v45, 80  ;;  %s879_s19 = smov 1   ;;  %s880_s20 = smov 127  }
  0x35   : > { %vm254_vm6 = vcmp.lt.s32.totalorder %v1027_v45, 112  ;;  %vm233_vm8 = vcmp.lt.s32.totalorder %v1027_v45, 48  ;;  %s881_s21 = smov 126   ;;  %s882_s22 = smov 125   ;;  %vm332_vm10 = vcmp.lt.s32.totalorder %v1027_v45, 3  ;;  %vm357_vm11 = vcmp.lt.s32.totalorder %v1027_v45, 2 }
  0x36   : > { %vm383_vm12 = vcmp.lt.s32.totalorder %v1027_v45, 1  ;;  %vm409_vm13 = vcmp.lt.s32.totalorder %v1027_v45, 127  ;;  %vm435_vm14 = vcmp.lt.s32.totalorder %v1027_v45, 126  ;;  %vm461_vm15 = vcmp.lt.s32.totalorder %v1027_v45, 125  ;;  %s656_s24 = sshll.u32 %s922_s16, 3  ;;  %s178_s16 = scalar_lea.vmem [#allocation7], %s646_s4 }
  0x37   : > { %s550_s5 = scalar_lea.hbm %s1196_s2, %s656_s24  ;;  %s552_s6 = sshll.u32 %s178_s16, 4  ;;  %s553_s6 = int_to_ptr.vmem [resolvable:$true] %s552_s6 }
  0x38   : > { %v182_v1 = vld.sshfl [vmem:[#allocation1] sm:$0xff pattern:$0x75316420]  ;;  %v183_v2 = vld.sshfl [vmem:[#allocation1 + $0x8] sm:$0xff pattern:$0x75316420] }
  0x39   : > { %v187_v3 = vsel %vm186_vm0, %v182_v1, -inf  ;;  %201 = vst [vmem:[#allocation1] ss:$2 sm:$0xff] %v1003_v0  ;;  %v194_v5 = vsel %vm186_vm0, %v183_v2, -inf }
  0x3a   : > { %v188_v4 = vrot.slane %v187_v3, 4  ;;  %v195_v7 = vrot.slane %v194_v5, 4 }
  0x3c   : > { %v189_v6 = vmax.f32 %v187_v3, %v188_v4  ;;  %v196_v14 = vmax.f32 %v194_v5, %v195_v7 }
  0x3e   : > { %v190_v8 = vrot.slane %v189_v6, 2  ;;  %v197_v20 = vrot.slane %v196_v14, 2 }
  0x40   : > { %v202_v9 = vld.sshfl [vmem:[#allocation1] sm:$0xff pattern:$0x75316420]  ;;  %v203_v10 = vld.sshfl [vmem:[#allocation1 + $0x8] sm:$0xff pattern:$0x75316420]  ;;  %v191_v16 = vmax.f32 %v189_v6, %v190_v8  ;;  %v198_v26 = vmax.f32 %v196_v14, %v197_v20 }
  0x41   : > { %v206_v11 = vsel %vm186_vm0, %v202_v9, 0.0  ;;  %v213_v12 = vsel %vm186_vm0, %v203_v10, 0.0 }
  0x42   : > { %v207_v13 = vrot.slane %v206_v11, 4  ;;  %v214_v15 = vrot.slane %v213_v12, 4  ;;  %v192_v22 = vrot.slane %v191_v16, 1  ;;  %v199_v31 = vrot.slane %v198_v26, 1 }
  0x44   : > { %v208_v17 = vadd.f32 %v207_v13, %v206_v11  ;;  %v215_v18 = vadd.f32 %v214_v15, %v213_v12  ;;  %v193_v28 = vmax.f32 %v191_v16, %v192_v22  ;;  %v200_v34 = vmax.f32 %v198_v26, %v199_v31 }
  0x46   : > { %v209_v19 = vrot.slane %v208_v17, 2  ;;  %v216_v21 = vrot.slane %v215_v18, 2 }
  0x48   : > { %v210_v23 = vadd.f32 %v209_v19, %v208_v17  ;;  %v217_v24 = vadd.f32 %v216_v21, %v215_v18 }
  0x4a   : > { %v211_v25 = vrot.slane %v210_v23, 1  ;;  %v218_v27 = vrot.slane %v217_v24, 1 }
  0x4c   : > { %v212_v29 = vadd.f32 %v211_v25, %v210_v23  ;;  %v219_v32 = vadd.f32 %v218_v27, %v217_v24 }
  0x4e   : > { %v222_v30 = vmul.f32 0.25, %v212_v29  ;;  %v223_v35 = vmul.f32 0.25, %v219_v32 }
  0x50   : > { %v1011_v33 = vsel %vm224_vm1, %v193_v28, %v222_v30  ;;  %v1016_v36 = vsel %vm224_vm1, %v200_v34, %v223_v35 }
  0x51   : > { %257 = vrot.lane.b32.xlu1 %v1011_v33, %s871_s17  ;;  %236 = vrot.lane.b32.xlu0 %v1011_v33, %s872_s27  ;;  %v286_v57 = vrot.slane %v1016_v36, 2  ;;  %v285_v63 = vrot.slane %v1011_v33, 2 }
  0x52   : > { %243 = vrot.lane.b32.xlu2 %v1011_v33, %s873_s7 }
  0x59   : > { %259 = vrot.lane.b32.xlu1 %v1016_v36, %s871_s17  ;;  %238 = vrot.lane.b32.xlu0 %v1016_v36, %s872_s27  ;;  %s554_s17 = sshll.u32 %s550_s5, 4  ;;  %s539_s27 = scalar_lea.sflag [#allocation4], %s993_s29  ;;  %s555_s17 = int_to_ptr.hbm [resolvable:$true] %s554_s17 }
  0x5a   : > { %245 = vrot.lane.b32.xlu2 %v1016_v36, %s873_s7  ;;  %s810_s7 = sshra.s32 %s555_s17, 4  ;;  %s811_s7 = int_to_ptr.hbm [resolvable:$true] %s810_s7 }
  0x5b   : > { %p817_p12 = scmp.lt.s32.totalorder %s811_s7, %s1196_s2 }
  0x61   : > { %266 = vrot.lane.b32.xlu1 %v1016_v36, %s874_s8  ;;  %264 = vrot.lane.b32.xlu0 %v1011_v33, %s874_s8  ;;  %s812_s8 = scalar_lea.hbm %s811_s7, 8 }
  0x62   : > { %227 = vrot.lane.b32.xlu2 %v1011_v33, %s875_s13  ;;  %p813_p1 = scmp.ne.s32.totalorder %s811_s7, %s812_s8 }
  0x64   : > { %p814_p3 = pnand %p813_p1, %p958_p13 }
  0x66   : > { %p815_p5 = pneg %p814_p3 }
  0x69   : > { %250 = vrot.lane.b32.xlu1 %v1011_v33, %s876_s14  ;;  %229 = vrot.lane.b32.xlu0 %v1016_v36, %s875_s13 }
  0x6a   : > { %252 = vrot.lane.b32.xlu2 %v1016_v36, %s876_s14  ;;  %s816_s14 = scalar_lea.hbm %s1196_s2, 16 }
  0x6b   : > { %p818_p8 = scmp.lt.s32.totalorder %s816_s14, %s812_s8 }
  0x6d   : > { %p819_p7 = por %p818_p8, %p817_p12 }
  0x6f   : > { %p820_p9 = pnand %p819_p7, %p815_p5 }
  0xac   : > { %v244_v37 = vpop.permute.xlu2 %243 }
  0xb4   : > { %v246_v40 = vpop.permute.xlu2 %245 }
  0xb5   : > { %v248_v48 = vsel %vm247_vm2, %v244_v37, %v246_v40  ;;  %v249_v49 = vsel %vm247_vm2, %v246_v40, %v244_v37  ;;  %v337_v37 = vld [vmem:[#allocation2] sm:$0xff]  ;;  %v338_v40 = vld [vmem:[#allocation2 + $0x8] sm:$0xff] }
  0xb6   : > { %v279_v55 = vrot.slane %v249_v49, 4  ;;  %v280_v56 = vrot.slane %v248_v48, 4  ;;  %v316_v48 = vld [vmem:[#allocation2 + $0x60] sm:$0xff] }
  0xbc   : > { %v228_v44 = vpop.permute.xlu2 %227 }
  0xc3   : > { %v258_v38 = vpop.permute.xlu1 %257  ;;  %v237_v39 = vpop.permute.xlu0 %236 }
  0xc4   : > { %v253_v54 = vpop.permute.xlu2 %252 }
  0xcb   : > { %v260_v41 = vpop.permute.xlu1 %259  ;;  %v239_v42 = vpop.permute.xlu0 %238 }
  0xcc   : > { %v262_v50 = vsel %vm261_vm3, %v258_v38, %v260_v41  ;;  %v241_v51 = vsel %vm240_vm4, %v237_v39, %v239_v42  ;;  %v242_v52 = vsel %vm240_vm4, %v239_v42, %v237_v39  ;;  %v263_v5 = vsel %vm261_vm3, %v260_v41, %v258_v38  ;;  %v339_v42 = vld [vmem:[#allocation2 + $0x10] sm:$0xff] }
  0xcd   : > { %v291_v58 = vrot.slane %v262_v50, 6  ;;  %v273_v59 = vrot.slane %v242_v52, 6  ;;  %v274_v60 = vrot.slane %v241_v51, 6  ;;  %v292_v16 = vrot.slane %v263_v5, 6  ;;  %v318_v50 = vld [vmem:[#allocation2 + $0x70] sm:$0xff]  ;;  %v319_v51 = vld [vmem:[#allocation2 + $0x78] sm:$0xff] }
  0xce   : > { %v364_v5 = vld [vmem:[#allocation2 + $0x28] sm:$0xff] }
  0xd3   : > { %v267_v46 = vpop.permute.xlu1 %266  ;;  %v265_v47 = vpop.permute.xlu0 %264 }
  0xd4   : > { %v269_v53 = vsel %vm268_vm5, %v265_v47, %v267_v46  ;;  %v270_v17 = vsel %vm268_vm5, %v267_v46, %v265_v47  ;;  %v340_v46 = vld [vmem:[#allocation2 + $0x18] sm:$0xff] }
  0xd5   : > { %v297_v1 = vrot.slane %v269_v53, 4  ;;  %v298_v19 = vrot.slane %v270_v17, 4 }
  0xdb   : > { %v251_v61 = vpop.permute.xlu1 %250  ;;  %v230_v62 = vpop.permute.xlu0 %229 }
  0xdc   : > { %v255_v2 = vsel %vm254_vm6, %v251_v61, %v253_v54  ;;  %v234_v3 = vsel %vm233_vm8, %v228_v44, %v230_v62  ;;  %v235_v4 = vsel %vm233_vm8, %v230_v62, %v228_v44  ;;  %v256_v12 = vsel %vm254_vm6, %v253_v54, %v251_v61  ;;  %v317_v44 = vld [vmem:[#allocation2 + $0x68] sm:$0xff] }
  0xdd   : > { %v309_v6 = vsel %vm301_vm7, %v255_v2, %v291_v58  ;;  %v302_v7 = vsel %vm301_vm7, %v235_v4, %v273_v59  ;;  %v303_v8 = vsel %vm301_vm7, %v234_v3, %v274_v60  ;;  %v310_v18 = vsel %vm301_vm7, %v256_v12, %v292_v16  ;;  %v363_v4 = vld [vmem:[#allocation2 + $0x20] sm:$0xff] }
  0xde   : > { %v311_v9 = vsel %vm186_vm0, %v309_v6, %v297_v1  ;;  %v304_v10 = vsel %vm186_vm0, %v302_v7, %v279_v55  ;;  %v305_v11 = vsel %vm186_vm0, %v303_v8, %v280_v56  ;;  %v312_v20 = vsel %vm186_vm0, %v310_v18, %v298_v19  ;;  %v365_v55 = vld [vmem:[#allocation2 + $0x30] sm:$0xff]  ;;  %v366_v56 = vld [vmem:[#allocation2 + $0x38] sm:$0xff]  ;;  %v389_v12 = vld [vmem:[#allocation2 + $0x40] sm:$0xff] }
  0xdf   : > { %v1054_v13 = vsel %vm306_vm9, %v311_v9, 0.0  ;;  %v1057_v14 = vsel %vm306_vm9, %v304_v10, %v285_v63  ;;  %v1060_v15 = vsel %vm306_vm9, %v305_v11, %v286_v57  ;;  %v1070_v21 = vsel %vm306_vm9, %v312_v20, 0.0  ;;  %v391_v19 = vld [vmem:[#allocation2 + $0x50] sm:$0xff]  ;;  %v392_v20 = vld [vmem:[#allocation2 + $0x58] sm:$0xff] }
  0xe0   : > { %326 = vrot.lane.b32.xlu1 %v1054_v13, %s877_s15  ;;  %328 = vrot.lane.b32.xlu2 %v1060_v15, %s877_s15  ;;  %v321_v60 = vmul.f32 %v317_v44, %v1060_v15  ;;  %v320_v62 = vmul.f32 %v316_v48, %v1057_v14  ;;  %v322_v63 = vmul.f32 %v318_v50, %v1054_v13  ;;  %v442_v44 = vld [vmem:[#allocation2 + $0xa8] sm:$0xff] }
  0xe1   : > { %324 = vrot.lane.b32.xlu0 %v1057_v14, %s877_s15  ;;  %v323_v1 = vmul.f32 %v319_v51, %v1070_v21 }
  0xe8   : > { %351 = vrot.lane.b32.xlu2 %v1054_v13, %s878_s18  ;;  %349 = vrot.lane.b32.xlu1 %v1057_v14, %s878_s18 }
  0xe9   : > { %330 = vrot.lane.b32.xlu0 %v1070_v21, %s877_s15 }
  0xf0   : > { %375 = vrot.lane.b32.xlu2 %v1057_v14, %s879_s19  ;;  %355 = vrot.lane.b32.xlu1 %v1070_v21, %s878_s18 }
  0xf1   : > { %353 = vrot.lane.b32.xlu0 %v1060_v15, %s878_s18 }
  0xf8   : > { %381 = vrot.lane.b32.xlu2 %v1070_v21, %s879_s19  ;;  %379 = vrot.lane.b32.xlu1 %v1060_v15, %s879_s19 }
  0xf9   : > { %377 = vrot.lane.b32.xlu0 %v1054_v13, %s879_s19 }
 0x100   : > { %405 = vrot.lane.b32.xlu2 %v1060_v15, %s880_s20  ;;  %403 = vrot.lane.b32.xlu1 %v1054_v13, %s880_s20 }
 0x101   : > { %401 = vrot.lane.b32.xlu0 %v1057_v14, %s880_s20 }
 0x108   : > { %429 = vrot.lane.b32.xlu2 %v1054_v13, %s881_s21  ;;  %427 = vrot.lane.b32.xlu1 %v1057_v14, %s881_s21 }
 0x109   : > { %407 = vrot.lane.b32.xlu0 %v1070_v21, %s880_s20 }
 0x110   : > { %453 = vrot.lane.b32.xlu2 %v1057_v14, %s882_s22  ;;  %433 = vrot.lane.b32.xlu1 %v1070_v21, %s881_s21 }
 0x111   : > { %431 = vrot.lane.b32.xlu0 %v1060_v15, %s881_s21 }
 0x118   : > { %459 = vrot.lane.b32.xlu2 %v1070_v21, %s882_s22  ;;  %457 = vrot.lane.b32.xlu1 %v1060_v15, %s882_s22 }
 0x119   : > { %455 = vrot.lane.b32.xlu0 %v1054_v13, %s882_s22  ;;  %v390_v13 = vld [vmem:[#allocation2 + $0x48] sm:$0xff] }
 0x13a   : > { %v329_v22 = vpop.permute.xlu2 %328 }
 0x142   : > { %v352_v23 = vpop.permute.xlu2 %351 }
 0x14a   : > { %v376_v26 = vpop.permute.xlu2 %375 }
 0x152   : > { %v327_v24 = vpop.permute.xlu1 %326  ;;  %v382_v30 = vpop.permute.xlu2 %381 }
 0x153   : > { %v325_v25 = vpop.permute.xlu0 %324 }
 0x154   : > { %v335_v38 = vsel %vm332_vm10, %v329_v22, %v325_v25  ;;  %v333_v41 = vsel %vm332_vm10, %v325_v25, %v329_v22  ;;  %v415_v25 = vld [vmem:[#allocation2 + $0x80] sm:$0xff] }
 0x155   : > { %v341_v49 = vmul.f32 %v337_v37, %v335_v38  ;;  %v342_v53 = vmul.f32 %v338_v40, %v333_v41  ;;  %v417_v37 = vld [vmem:[#allocation2 + $0x90] sm:$0xff]  ;;  %v418_v38 = vld [vmem:[#allocation2 + $0x98] sm:$0xff] }
 0x157   : > { %v345_v8 = vadd.f32 %v341_v49, %v320_v62  ;;  %v346_v9 = vadd.f32 %v342_v53, %v321_v60  ;;  %v443_v53 = vld [vmem:[#allocation2 + $0xb0] sm:$0xff] }
 0x15a   : > { %v350_v27 = vpop.permute.xlu1 %349  ;;  %v406_v34 = vpop.permute.xlu2 %405 }
 0x15b   : > { %v331_v28 = vpop.permute.xlu0 %330 }
 0x15c   : > { %v336_v43 = vsel %vm332_vm10, %v331_v28, %v327_v24  ;;  %v334_v47 = vsel %vm332_vm10, %v327_v24, %v331_v28 }
 0x15d   : > { %v343_v54 = vmul.f32 %v339_v42, %v336_v43  ;;  %v344_v61 = vmul.f32 %v340_v46, %v334_v47  ;;  %v441_v43 = vld [vmem:[#allocation2 + $0xa0] sm:$0xff] }
 0x15f   : > { %v347_v10 = vadd.f32 %v343_v54, %v322_v63  ;;  %v348_v11 = vadd.f32 %v344_v61, %v323_v1  ;;  %v444_v54 = vld [vmem:[#allocation2 + $0xb8] sm:$0xff] }
 0x162   : > { %v356_v29 = vpop.permute.xlu1 %355  ;;  %v1096_v39 = vpop.permute.xlu2 %429 }
 0x163   : > { %v354_v31 = vpop.permute.xlu0 %353  ;;  %v359_v57 = vsel %vm357_vm11, %v352_v23, %v356_v29  ;;  %v361_v58 = vsel %vm357_vm11, %v356_v29, %v352_v23 }
 0x164   : > { %v369_v2 = vmul.f32 %v365_v55, %v361_v58  ;;  %v370_v3 = vmul.f32 %v366_v56, %v359_v57  ;;  %v358_v6 = vsel %vm357_vm11, %v350_v27, %v354_v31  ;;  %v360_v7 = vsel %vm357_vm11, %v354_v31, %v350_v27  ;;  %v416_v27 = vld [vmem:[#allocation2 + $0x88] sm:$0xff] }
 0x165   : > { %v367_v16 = vmul.f32 %v363_v4, %v360_v7  ;;  %v368_v17 = vmul.f32 %v364_v5, %v358_v6  ;;  %v469_v7 = vld [vmem:[#allocation2 + $0xd0] sm:$0xff] }
 0x166   : > { %v373_v23 = vadd.f32 %v369_v2, %v347_v10  ;;  %v374_v24 = vadd.f32 %v370_v3, %v348_v11  ;;  %v467_v2 = vld [vmem:[#allocation2 + $0xc0] sm:$0xff]  ;;  %v468_v3 = vld [vmem:[#allocation2 + $0xc8] sm:$0xff] }
 0x167   : > { %v371_v46 = vadd.f32 %v367_v16, %v345_v8  ;;  %v372_v47 = vadd.f32 %v368_v17, %v346_v9  ;;  %v470_v8 = vld [vmem:[#allocation2 + $0xd8] sm:$0xff] }
 0x16a   : > { %v380_v32 = vpop.permute.xlu1 %379  ;;  %v454_v18 = vpop.permute.xlu2 %453 }
 0x16b   : > { %v378_v33 = vpop.permute.xlu0 %377  ;;  %v384_v14 = vsel %vm383_vm12, %v376_v26, %v380_v32  ;;  %v386_v15 = vsel %vm383_vm12, %v380_v32, %v376_v26 }
 0x16c   : > { %v385_v21 = vsel %vm383_vm12, %v378_v33, %v382_v30  ;;  %v387_v22 = vsel %vm383_vm12, %v382_v30, %v378_v33  ;;  %v393_v31 = vmul.f32 %v389_v12, %v386_v15  ;;  %v394_v32 = vmul.f32 %v390_v13, %v384_v14 }
 0x16d   : > { %v395_v41 = vmul.f32 %v391_v19, %v387_v22  ;;  %v396_v42 = vmul.f32 %v392_v20, %v385_v21 }
 0x16e   : > { %v397_v56 = vadd.f32 %v393_v31, %v371_v46  ;;  %v398_v57 = vadd.f32 %v394_v32, %v372_v47 }
 0x16f   : > { %v400_v60 = vadd.f32 %v396_v42, %v374_v24 }
 0x172   : > { %v1093_v35 = vpop.permute.xlu1 %403 }
 0x173   : > { %v402_v36 = vpop.permute.xlu0 %401 }
 0x174   : > { %v410_v26 = vsel %vm409_vm13, %v402_v36, %v406_v34  ;;  %v412_v28 = vsel %vm409_vm13, %v406_v34, %v402_v36 }
 0x175   : > { %v419_v48 = vmul.f32 %v415_v25, %v410_v26  ;;  %v420_v49 = vmul.f32 %v416_v27, %v412_v28 }
 0x177   : > { %v423_v61 = vadd.f32 %v419_v48, %v397_v56  ;;  %v424_v62 = vadd.f32 %v420_v49, %v398_v57 }
 0x17a   : > { %v428_v52 = vpop.permute.xlu1 %427 }
 0x17b   : > { %v408_v59 = vpop.permute.xlu0 %407 }
 0x17c   : > { %v411_v40 = vsel %vm409_vm13, %v1093_v35, %v408_v59  ;;  %v413_v30 = vsel %vm409_vm13, %v408_v59, %v1093_v35  ;;  %v399_v59 = vadd.f32 %v395_v41, %v373_v23 }
 0x17d   : > { %v421_v50 = vmul.f32 %v417_v37, %v411_v40  ;;  %v422_v51 = vmul.f32 %v418_v38, %v413_v30 }
 0x17f   : > { %v425_v4 = vadd.f32 %v421_v50, %v399_v59  ;;  %v426_v5 = vadd.f32 %v422_v51, %v400_v60 }
 0x182   : > { %v434_v29 = vpop.permute.xlu1 %433 }
 0x183   : > { %v432_v33 = vpop.permute.xlu0 %431  ;;  %v437_v35 = vsel %vm435_vm14, %v1096_v39, %v434_v29  ;;  %v439_v55 = vsel %vm435_vm14, %v434_v29, %v1096_v39  ;;  %v460_v39 = vpop.permute.xlu2 %459 }
 0x184   : > { %v436_v34 = vsel %vm435_vm14, %v428_v52, %v432_v33  ;;  %v438_v36 = vsel %vm435_vm14, %v432_v33, %v428_v52  ;;  %v447_v63 = vmul.f32 %v443_v53, %v437_v35  ;;  %v448_v1 = vmul.f32 %v444_v54, %v439_v55 }
 0x185   : > { %v445_v58 = vmul.f32 %v441_v43, %v436_v34  ;;  %v446_v52 = vmul.f32 %v442_v44, %v438_v36 }
 0x186   : > { %v451_v19 = vadd.f32 %v447_v63, %v425_v4  ;;  %v452_v20 = vadd.f32 %v448_v1, %v426_v5 }
 0x187   : > { %v449_v9 = vadd.f32 %v445_v58, %v423_v61  ;;  %v450_v10 = vadd.f32 %v446_v52, %v424_v62 }
 0x18a   : > { %v458_v6 = vpop.permute.xlu1 %457 }
 0x18b   : > { %v462_v11 = vsel %vm461_vm15, %v454_v18, %v458_v6  ;;  %v464_v12 = vsel %vm461_vm15, %v458_v6, %v454_v18  ;;  %v456_v13 = vpop.permute.xlu0 %455 }
 0x18c   : > { %v471_v14 = vmul.f32 %v467_v2, %v462_v11  ;;  %v472_v15 = vmul.f32 %v468_v3, %v464_v12  ;;  %v463_v16 = vsel %vm461_vm15, %v456_v13, %v460_v39  ;;  %v465_v17 = vsel %vm461_vm15, %v460_v39, %v456_v13 }
 0x18d   : > { %v473_v21 = vmul.f32 %v469_v7, %v463_v16  ;;  %v474_v22 = vmul.f32 %v470_v8, %v465_v17 }
 0x18e   : > { %v475_v23 = vadd.f32 %v471_v14, %v449_v9  ;;  %v476_v24 = vadd.f32 %v472_v15, %v450_v10 }
 0x18f   : > { %v477_v25 = vadd.f32 %v473_v21, %v451_v19  ;;  %v478_v27 = vadd.f32 %v474_v22, %v452_v20 }
 0x191   : > { %v479_v26 = vadd.f32 %v477_v25, %v475_v23  ;;  %v486_v28 = vadd.f32 %v478_v27, %v476_v24 }
 0x193   : > { %v480_v18 = vrot.slane %v479_v26, 4  ;;  %v487_v29 = vrot.slane %v486_v28, 4 }
 0x195   : > { %v481_v31 = vadd.f32 %v480_v18, %v479_v26  ;;  %v488_v32 = vadd.f32 %v487_v29, %v486_v28 }
 0x197   : > { %v482_v37 = vrot.slane %v481_v31, 2  ;;  %v489_v38 = vrot.slane %v488_v32, 2 }
 0x199   : > { %v483_v40 = vadd.f32 %v482_v37, %v481_v31  ;;  %v490_v30 = vadd.f32 %v489_v38, %v488_v32 }
 0x19b   : > { %v484_v45 = vrot.slane %v483_v40, 1  ;;  %v491_v33 = vrot.slane %v490_v30, 1 }
 0x19d   : > { %v485_v41 = vadd.f32 %v484_v45, %v483_v40  ;;  %v492_v42 = vadd.f32 %v491_v33, %v490_v30 }
 0x19f   : > { %v648_v43 = vmul.f32 -1.442695, %v485_v41  ;;  %v649_v44 = vmul.f32 -1.442695, %v492_v42 }
 0x1a1   : > { %728 = vpow2.f32 %v648_v43 }
 0x1a2   : > { %730 = vpow2.f32 %v649_v44 }
 0x1a7   : > { %v729_v34 = vpop.eup %728 }
 0x1a8   : > { %v731_v36 = vpop.eup %730  ;;  %v499_v46 = vadd.f32 1.0, %v729_v34 }
 0x1a9   : > { %v500_v47 = vadd.f32 1.0, %v731_v36 }
 0x1aa   : > { %732 = vrcp.f32 %v499_v46  ;;  %vm506_vm3 = vweird.f32 %v499_v46  ;;  %v512_v52 = vand.u32 2147483648, %v499_v46  ;;  %v510_v60 = vand.u32 2147483647, %v499_v46 }
 0x1ab   : > { %734 = vrcp.f32 %v500_v47  ;;  %v527_v55 = vand.u32 2147483648, %v500_v47  ;;  %v525_v57 = vand.u32 2147483647, %v500_v47  ;;  %vm521_vm5 = vweird.f32 %v500_v47 }
 0x1ac   : > { %v513_v2 = vor.u32 1.1754944e-38, %v512_v52  ;;  %vm511_vm8 = vcmp.eq.f32.partialorder %v510_v60, 8.507059e+37 }
 0x1ad   : > { %v528_v62 = vor.u32 1.1754944e-38, %v527_v55  ;;  %vm526_vm7 = vcmp.eq.f32.partialorder %v525_v57, 8.507059e+37 }
 0x1b0   : > { %v733_v48 = vpop.eup %732 }
 0x1b1   : > { %v735_v49 = vpop.eup %734  ;;  %v502_v50 = vmul.f32 %v733_v48, %v499_v46  ;;  %vm507_vm1 = vweird.f32 %v733_v48 }
 0x1b2   : > { %v517_v51 = vmul.f32 %v735_v49, %v500_v47  ;;  %vm522_vm2 = vweird.f32 %v735_v49  ;;  %vm1152_vm4 = vmor %vm506_vm3, %vm507_vm1 }
 0x1b3   : > { %v503_v53 = vsub.f32 1.0, %v502_v50  ;;  %vm523_vm6 = vmor %vm521_vm5, %vm522_vm2 }
 0x1b4   : > { %v518_v54 = vsub.f32 1.0, %v517_v51 }
 0x1b5   : > { %v504_v35 = vmul.f32 %v733_v48, %v503_v53 }
 0x1b6   : > { %v519_v56 = vmul.f32 %v735_v49, %v518_v54 }
 0x1b7   : > { %v505_v58 = vadd.f32 %v733_v48, %v504_v35 }
 0x1b8   : > { %v520_v61 = vadd.f32 %v735_v49, %v519_v56 }
 0x1b9   : > { %v509_v63 = vsel %vm1152_vm4, %v733_v48, %v505_v58 }
 0x1ba   : > { %v524_v1 = vsel %vm523_vm6, %v735_v49, %v520_v61  ;;  %v514_v5 = vsel %vm511_vm8, %v513_v2, %v509_v63 }
 0x1bb   : > { %v529_v3 = vsel %vm526_vm7, %v528_v62, %v524_v1 }
 0x1bc   : > { %v533_v4 = vrot.slane %v529_v3, 4 }
 0x1be   : > { %v534_v6 = vsel %vm186_vm0, %v514_v5, %v533_v4 }
 0x1bf   : > { %v536_v7 = vmul.f32 %v534_v6, %v1003_v0 }
 0x1c1   : > { %537 = vst [vmem:[%s178_s16] sm:$0xff] %v536_v7 }
 0x1c2   : > { %823 = shalt.err (!%p820_p9)
}
 0x1c3   : > { %663 = dma.vmem_to_hbm [thread:$0]  (%p958_p13), %s553_s6, 128, %s555_s17, %s539_s27  }
 0x1c4 PF: > { %s566_s29 = sand.u32 1, %s854_s9   ;;  %p1204_p10 = scmp.ge.s32.totalorder %s866_s12, 2 }
 0x1c5   : > { %s567_s19 = scalar_lea.sflag [#allocation4], %s566_s29 }
 0x1c6   : > { %p674_p11 = pnand %p1204_p10, %p963_p4 }
 0x1c8   : > { %p675_p0 = pneg %p674_p11 }
 0x1ca   : > { %849 = dma.done.wait (%p675_p0), %s567_s19, 128  }
 0x1cb   : > { %851 = vsyncadd (%p675_p0), %s567_s19, 4294967168  ;;  %p16_p2 = scmp.ge.s32.totalorder %s938_s23, 4   ;;  %s1205_s9 = smov %s858_s10 }
 0x1cc   : > { %s1206_s10 = smov %s862_s11  ;;  %s1207_s11 = smov %s950_s26 }
 0x1cd   : > { %s1208_s12 = smov %s938_s23  ;;  %18 = sbr.rel (!%p16_p2) target bundleno = 6 (0x6), region = 84 }
 0x1d2   :  { %573 = vsyncpa [#allocation3], 1 }
 0x1d3   :  { %575 = vsyncpa [#allocation3 + $0x1], 1 }
 0x1d4   :  { %576 = vsyncpa [#allocation6], 1 }
 0x1d5   :  { %578 = vsyncpa [#allocation6 + $0x1], 1 }
 0x1d6   :  { %579 = vsyncpa [#allocation4], 1 }
 0x1d7   :  { %581 = vsyncpa [#allocation4 + $0x1], 1 }

</bundles_post_ra>
